<compile_context>
chip_gen: v6e
topology: v6e:2x2x1
jax: 0.10.0
libtpu: 0.0.40
codegen_flags: <defaults>
</compile_context>

<pallas_src>
import math

import jax
import jax.numpy as jnp
from jax.experimental import pallas as pl
from jax.experimental.pallas import tpu as pltpu


def _round_up(a, b):
    return ((a + b - 1) // b) * b


def _make_biasfree_ln_kernel(c, k):
    """Kernel over a (TR, k*C) tile holding k logical rows per kernel row."""
    kc = k * c

    def kernel(x_ref, w_ref, o_ref):
        x = x_ref[...].astype(jnp.float32)                       # (TR, kC)
        inv_c = 1.0 / c

        # Block-diagonal segment matrix seg: (kC, k); column j is 1 on lanes
        # [j*C, (j+1)*C).  Built from iotas with range compares (no int div).
        lane = jax.lax.broadcasted_iota(jnp.int32, (kc, k), 0)
        lo = jax.lax.broadcasted_iota(jnp.int32, (kc, k), 1) * c
        seg = ((lane >= lo) & (lane < lo + c)).astype(jnp.float32)

        def rowsum(v):  # segmented per-logical-row sum on the (idle) MXU
            return jnp.dot(v, seg, precision=jax.lax.Precision.HIGHEST,
                           preferred_element_type=jnp.float32)    # (TR, k)

        if k > 1:
            # Transposed segment matrix for broadcasting (TR, k) -> (TR, kC).
            lane_t = jax.lax.broadcasted_iota(jnp.int32, (k, kc), 1)
            lo_t = jax.lax.broadcasted_iota(jnp.int32, (k, kc), 0) * c
            seg_t = ((lane_t >= lo_t) & (lane_t < lo_t + c)).astype(jnp.float32)

            def rowbcast(v):
                return jnp.dot(v, seg_t, precision=jax.lax.Precision.HIGHEST,
                               preferred_element_type=jnp.float32)  # (TR, kC)
        else:
            def rowbcast(v):   # (TR, 1) broadcasts over lanes directly
                return v

        # Two-pass biased variance (matches torch.var(unbiased=False)).
        mean = rowsum(x) * inv_c                                  # (TR, k)
        d = x - rowbcast(mean)                                    # (TR, kC)
        sigma = rowsum(d * d) * inv_c                             # (TR, k)
        inv = jax.lax.rsqrt(jnp.maximum(sigma, 0.0) + 1e-5)       # (TR, k)

        w = w_ref[...].astype(jnp.float32)                        # (1, kC)
        o_ref[...] = (x * rowbcast(inv) * w).astype(o_ref.dtype)

    return kernel


def biasfree_layernorm(x, weight, *, target_tile_bytes=4 << 20, min_tile_bytes=1 << 20):
    """x: (..., C) array, weight: (C,) array. Returns same shape/dtype as x."""
    orig_shape = x.shape
    c = int(orig_shape[-1])
    rows = int(math.prod(orig_shape[:-1])) if len(orig_shape) > 1 else 1

    # ---- lane-dense repack (copy-less reshape) ---------------------------
    if c % 128 == 0:
        k = 1
    else:
        k = 128 // math.gcd(c, 128)
        if rows % k != 0:
            # TODO(synk): remainder rows could be handled by a tiny second
            # pallas_call; fall back to the masked-store (k=1) path instead.
            k = 1
    kc = k * c
    r = rows // k

    x_view = x.reshape(r, kc)
    if k > 1:
        w_view = jnp.tile(weight.reshape(-1), k).reshape(1, kc)
    else:
        w_view = weight.reshape(1, c)

    itemsize = jnp.dtype(x.dtype).itemsize
    sublane = max(8, 32 // itemsize)          # 8 for f32, 16 for bf16/f16
    padded_c = _round_up(kc, 128)             # lanes are physically padded to 128
    row_bytes = padded_c * itemsize

    # ---- tile-size heuristics --------------------------------------------
    def rows_for(nbytes):
        return max(sublane, (nbytes // row_bytes) // sublane * sublane)

    tr_budget = rows_for(target_tile_bytes)       # ~4 MiB x-tile target
    tr_floor = rows_for(min_tile_bytes)           # keep tiles >= ~1 MiB ...
    tr_grid = _round_up(pl.cdiv(r, 8), sublane)   # ... while aiming for >=8 grid
                                                  # steps (>=4 / TensorCore on v7x)

    # VMEM accounting with lane/sublane padding: 2x double-buffered input,
    # 2x double-buffered output, ~4 f32-sized in-kernel temporaries.
    try:
        vmem_cap = int(pltpu.get_tpu_info().vmem_capacity_bytes)
    except Exception:
        vmem_cap = 64 << 20                       # v7x has the smallest VMEM
    headroom = 2 << 20
    vmem_budget = min((vmem_cap * 3) // 4, 96 << 20)
    per_row_vmem = padded_c * (4 * itemsize + 4 * 4)
    tr_vmem = max(sublane, ((vmem_budget - headroom) // per_row_vmem) // sublane * sublane)

    tr = min(tr_budget, max(tr_grid, tr_floor))   # grid depth, but not below ~1 MiB tiles
    tr = max(sublane, min(tr, tr_vmem, _round_up(r, sublane)))
    grid_n = int(pl.cdiv(r, tr))                  # ragged last block handled by Pallas

    vmem_needed = tr * per_row_vmem + padded_c * 4 * 2 + headroom
    vmem_limit = int(min(max(vmem_needed, 32 << 20), vmem_budget))

    out = pl.pallas_call(
        _make_biasfree_ln_kernel(c, k),
        out_shape=jax.ShapeDtypeStruct((r, kc), x.dtype),
        grid_spec=pltpu.PrefetchScalarGridSpec(
            num_scalar_prefetch=0,
            grid=(grid_n,),
            in_specs=[
                pl.BlockSpec((tr, kc), lambda i: (i, 0)),
                pl.BlockSpec((1, kc), lambda i: (0, 0)),   # invariant block index
            ],
            out_specs=pl.BlockSpec((tr, kc), lambda i: (i, 0)),
        ),
        compiler_params=pltpu.CompilerParams(
            dimension_semantics=("parallel",),
            vmem_limit_bytes=vmem_limit,
        ),
    )(x_view, w_view)

    return out.reshape(orig_shape)


if __name__ == "__main__":
    key = jax.random.PRNGKey(0)
    B, S, C = 2, 16, 32  # (batch, H*W, channels) as used in Restormer blocks
    x = jax.random.normal(key, (B, S, C), dtype=jnp.float32)
    # non-uniform weight to exercise the weight path (module inits to ones)
    weight = 0.5 + jnp.arange(C, dtype=jnp.float32) / C

    out = jax.block_until_ready(biasfree_layernorm(x, weight))

    # pure-JAX reference of the PyTorch semantics
    sigma = jnp.var(x, axis=-1, keepdims=True)            # unbiased=False
    ref = x / jnp.sqrt(sigma + 1e-5) * weight
    assert jnp.allclose(out, ref, atol=1e-4, rtol=1e-4), "mismatch (lane-dense path)"

    # non-repackable / ragged row count -> masked-store fallback + ragged last block
    x2 = jax.random.normal(jax.random.PRNGKey(1), (3, 7, 5, C), dtype=jnp.float32)
    out2 = jax.block_until_ready(biasfree_layernorm(x2, weight))
    sigma2 = jnp.var(x2, axis=-1, keepdims=True)
    ref2 = x2 / jnp.sqrt(sigma2 + 1e-5) * weight
    assert jnp.allclose(out2, ref2, atol=1e-4, rtol=1e-4), "mismatch (fallback path)"

    print("KERNEL_OK")
</pallas_src>

<mosaic_0001>
module attributes {stable_mosaic.version = 11 : i64} {
  func.func @kernel(%arg0: i32, %arg1: memref<8x128xf32, #tpu.memory_space<vmem>>, %arg2: memref<1x128xf32, #tpu.memory_space<vmem>>, %arg3: memref<8x128xf32, #tpu.memory_space<vmem>>) attributes {dimension_semantics = [#tpu.dimension_semantics<parallel>], iteration_bounds = array<i64: 1>, scalar_prefetch = 0 : i64, scratch_operands = 0 : i64, tpu.core_type = #tpu.core_type<tc>, window_params = [{transform_indices = @transform_0, window_bounds = array<i64: 8, 128>}, {pipeline_mode = #tpu.pipeline_mode<synchronous>, transform_indices = @transform_1, window_bounds = array<i64: 1, 128>}, {transform_indices = @transform_2, window_bounds = array<i64: 8, 128>}]} {
    %c0 = arith.constant 0 : index
    %c0_0 = arith.constant 0 : index
    %0 = vector.load %arg1[%c0, %c0_0] : memref<8x128xf32, #tpu.memory_space<vmem>>, vector<8x128xf32>
    %1 = tpu.iota {dimensions = array<i32: 0>} : vector<128x4xi32>
    %2 = tpu.iota {dimensions = array<i32: 1>} : vector<128x4xi32>
    %c32_i32 = arith.constant 32 : i32
    %3 = vector.broadcast %c32_i32 : i32 to vector<128x4xi32>
    %4 = arith.muli %2, %3 : vector<128x4xi32>
    %5 = arith.cmpi sge, %1, %4 : vector<128x4xi32>
    %c32_i32_1 = arith.constant 32 : i32
    %6 = vector.broadcast %c32_i32_1 : i32 to vector<128x4xi32>
    %7 = arith.addi %4, %6 : vector<128x4xi32>
    %8 = arith.cmpi slt, %1, %7 : vector<128x4xi32>
    %9 = arith.andi %5, %8 : vector<128x4xi1>
    %10 = arith.extui %9 : vector<128x4xi1> to vector<128x4xi32>
    %11 = arith.sitofp %10 : vector<128x4xi32> to vector<128x4xf32>
    %12 = tpu.iota {dimensions = array<i32: 1>} : vector<4x128xi32>
    %13 = tpu.iota {dimensions = array<i32: 0>} : vector<4x128xi32>
    %c32_i32_2 = arith.constant 32 : i32
    %14 = vector.broadcast %c32_i32_2 : i32 to vector<4x128xi32>
    %15 = arith.muli %13, %14 : vector<4x128xi32>
    %16 = arith.cmpi sge, %12, %15 : vector<4x128xi32>
    %c32_i32_3 = arith.constant 32 : i32
    %17 = vector.broadcast %c32_i32_3 : i32 to vector<4x128xi32>
    %18 = arith.addi %15, %17 : vector<4x128xi32>
    %19 = arith.cmpi slt, %12, %18 : vector<4x128xi32>
    %20 = arith.andi %16, %19 : vector<4x128xi1>
    %21 = arith.extui %20 : vector<4x128xi1> to vector<4x128xi32>
    %22 = arith.sitofp %21 : vector<4x128xi32> to vector<4x128xf32>
    %cst = arith.constant dense<0.000000e+00> : vector<8x4xf32>
    %23 = tpu.matmul %0, %11, %cst {dimension_numbers = #tpu.dot_dimension_numbers<[1], [0], [0], [1], [0, 0, 1, 1], [], []>, precision = #tpu.contract_precision<fp32>} : vector<8x128xf32>, vector<128x4xf32>, vector<8x4xf32> -> vector<8x4xf32>
    %cst_4 = arith.constant 3.125000e-02 : f32
    %24 = vector.broadcast %cst_4 : f32 to vector<8x4xf32>
    %25 = arith.mulf %23, %24 : vector<8x4xf32>
    %cst_5 = arith.constant dense<0.000000e+00> : vector<8x128xf32>
    %26 = tpu.matmul %25, %22, %cst_5 {dimension_numbers = #tpu.dot_dimension_numbers<[1], [0], [0], [1], [0, 0, 1, 1], [], []>, precision = #tpu.contract_precision<fp32>} : vector<8x4xf32>, vector<4x128xf32>, vector<8x128xf32> -> vector<8x128xf32>
    %27 = arith.subf %0, %26 : vector<8x128xf32>
    %28 = arith.mulf %27, %27 : vector<8x128xf32>
    %cst_6 = arith.constant dense<0.000000e+00> : vector<8x4xf32>
    %29 = tpu.matmul %28, %11, %cst_6 {dimension_numbers = #tpu.dot_dimension_numbers<[1], [0], [0], [1], [0, 0, 1, 1], [], []>, precision = #tpu.contract_precision<fp32>} : vector<8x128xf32>, vector<128x4xf32>, vector<8x4xf32> -> vector<8x4xf32>
    %cst_7 = arith.constant 3.125000e-02 : f32
    %30 = vector.broadcast %cst_7 : f32 to vector<8x4xf32>
    %31 = arith.mulf %29, %30 : vector<8x4xf32>
    %cst_8 = arith.constant 0.000000e+00 : f32
    %32 = vector.broadcast %cst_8 : f32 to vector<8x4xf32>
    %33 = arith.maximumf %31, %32 : vector<8x4xf32>
    %cst_9 = arith.constant 9.99999974E-6 : f32
    %34 = vector.broadcast %cst_9 : f32 to vector<8x4xf32>
    %35 = arith.addf %33, %34 : vector<8x4xf32>
    %36 = math.rsqrt %35 : vector<8x4xf32>
    %c0_10 = arith.constant 0 : index
    %c0_11 = arith.constant 0 : index
    %37 = vector.load %arg2[%c0_10, %c0_11] : memref<1x128xf32, #tpu.memory_space<vmem>>, vector<1x128xf32>
    %cst_12 = arith.constant dense<0.000000e+00> : vector<8x128xf32>
    %38 = tpu.matmul %36, %22, %cst_12 {dimension_numbers = #tpu.dot_dimension_numbers<[1], [0], [0], [1], [0, 0, 1, 1], [], []>, precision = #tpu.contract_precision<fp32>} : vector<8x4xf32>, vector<4x128xf32>, vector<8x128xf32> -> vector<8x128xf32>
    %39 = arith.mulf %0, %38 : vector<8x128xf32>
    %40 = vector.broadcast %37 : vector<1x128xf32> to vector<8x128xf32>
    %41 = arith.mulf %39, %40 : vector<8x128xf32>
    %c0_13 = arith.constant 0 : index
    %c0_14 = arith.constant 0 : index
    %42 = vector.load %arg3[%c0_13, %c0_14] : memref<8x128xf32, #tpu.memory_space<vmem>>, vector<8x128xf32>
    tpu.vector_store %arg3[%c0_13, %c0_14], %41 {strides = array<i32>} : memref<8x128xf32, #tpu.memory_space<vmem>>, vector<8x128xf32>,
    return
  }
  func.func @transform_0(%arg0: i32) -> (i32, i32) {
    %c0_i32 = arith.constant 0 : i32
    %c0_i32_0 = arith.constant 0 : i32
    return %arg0, %c0_i32 : i32, i32
  }
  func.func @transform_1(%arg0: i32) -> (i32, i32) {
    %c0_i32 = arith.constant 0 : i32
    %c0_i32_0 = arith.constant 0 : i32
    %c0_i32_1 = arith.constant 0 : i32
    return %c0_i32, %c0_i32_0 : i32, i32
  }
  func.func @transform_2(%arg0: i32) -> (i32, i32) {
    %c0_i32 = arith.constant 0 : i32
    %c0_i32_0 = arith.constant 0 : i32
    return %arg0, %c0_i32 : i32, i32
  }
}

</mosaic_0001>

<bundles_post_ra>
// kernel: tpu_custom_call.1
= control target key start
LH: loop header
LB: loop body
LE: loop exit
PB: predicated region body
PF: predicated region fallthrough
CT: control target
= control target key end

     0   :  { %7 = vsyncpa [#allocation3], 0  ;;  %s4330_s0 = inlined_call_operand.hbm [shape: f32[8,128], index: 0, kind: input, shape index: {}]   ;;  %s4331_s1 = inlined_call_operand.vmem [shape: f32[1,128], index: 1, kind: input, shape index: {}]   ;;  %s4332_s2 = inlined_call_operand.hbm [shape: f32[8,128], index: 2, kind: output, shape index: {}]  }
   0x1   :  { %8 = vsyncpa [#allocation4], 0  ;;  %s3230_s9 = smov [#allocation2]  }
   0x2   :  { %s15_s10 = sshll.u32 %s3230_s9, 4  ;;  %s16_s10 = int_to_ptr.vmem [resolvable:$true] %s15_s10 }
   0x3   :  { %s3194_s11 = scalar_lea.vmem %s16_s10, 128  ;;  %p3199_p1 = scmp.lt.s32.totalorder %s16_s10, %s16_s10 }
   0x4   :  { %p3195_p0 = scmp.ne.s32.totalorder %s16_s10, %s3194_s11  ;;  %p3200_p2 = scmp.lt.s32.totalorder %s3194_s11, %s3194_s11 }
   0x6   :  { %p3201_p3 = por %p3200_p2, %p3199_p1 }
   0x8   :  { %p3202_p4 = pnand %p3201_p3, %p3195_p0 }
   0xa   :  { %3205 = shalt.err (!%p3202_p4)
}
   0xb   :  { %18 = dma.hbm_to_vmem [thread:$0]  %s4330_s0, 128, %s16_s10, [#allocation3]   ;;  %v25_v0 = vlaneseq }
   0xc   :  { %3226 = dma.done.wait [#allocation3], 128  }
   0xd   :  { %3227 = vsyncadd [#allocation3], 4294967168  ;;  %v4381_v1 = vmov 0.0   ;;  %v3255_v2 = vshrl.u32 %v25_v0, 7  ;;  %v3257_v3 = vand.u32 127, %v25_v0  ;;  %vm4333_vm0 = vmmov 0  }
   0xe   :  { %2698 = vmatprep.subr.mxu0 %v4381_v1  ;;  %2733 = vmatprep.subr.mxu1 %v4381_v1  ;;  %v4343_v15 = vmov 1.0   ;;  %v4397_v31 = vmov 0  ;;  %v4400_v36 = vmov 0  ;;  %v4404_v45 = vmov 0  ;;  %s3234_s15 = smov [#allocation5]  }
   0xf   :  { %2730 = vmatprep.mubr.msk.f32.mxu0 %vm4333_vm0, %v4381_v1  ;;  %2765 = vmatprep.mubr.msk.f32.mxu1 %vm4333_vm0, %v4381_v1  ;;  %v41_v4 = vadd.s32 120, %v3255_v2  ;;  %v3265_v5 = vmul.u32 32, %v3257_v3  ;;  %v40_v6 = vadd.s32 112, %v3255_v2  ;;  %v39_v7 = vadd.s32 104, %v3255_v2  ;;  %s2341_s16 = sshll.u32 %s3234_s15, 4  ;;  %s2342_s16 = int_to_ptr.vmem [resolvable:$true] %s2341_s16 }
  0x10   :  { %v38_v8 = vadd.s32 96, %v3255_v2  ;;  %v37_v9 = vadd.s32 88, %v3255_v2  ;;  %v36_v10 = vadd.s32 80, %v3255_v2  ;;  %v35_v11 = vadd.s32 72, %v3255_v2  ;;  %s3206_s17 = scalar_lea.vmem %s2342_s16, 128  ;;  %p3211_p6 = scmp.lt.s32.totalorder %s2342_s16, %s2342_s16 }
  0x11   :  { %vm60_vm1 = vcmp.ge.s32.totalorder %v41_v4, %v3265_v5  ;;  %v3275_v12 = vadd.s32 32, %v3265_v5  ;;  %vm59_vm2 = vcmp.ge.s32.totalorder %v40_v6, %v3265_v5  ;;  %vm58_vm3 = vcmp.ge.s32.totalorder %v39_v7, %v3265_v5  ;;  %p3207_p5 = scmp.ne.s32.totalorder %s2342_s16, %s3206_s17  ;;  %p3212_p7 = scmp.lt.s32.totalorder %s3206_s17, %s3206_s17 }
  0x12   :  { %vm57_vm4 = vcmp.ge.s32.totalorder %v38_v8, %v3265_v5  ;;  %vm56_vm5 = vcmp.ge.s32.totalorder %v37_v9, %v3265_v5  ;;  %vm55_vm6 = vcmp.ge.s32.totalorder %v36_v10, %v3265_v5  ;;  %vm54_vm7 = vcmp.ge.s32.totalorder %v35_v11, %v3265_v5 }
  0x13   :  { %vm77_vm8 = vcmp.lt.s32.totalorder %v41_v4, %v3275_v12  ;;  %vm76_vm9 = vcmp.lt.s32.totalorder %v40_v6, %v3275_v12  ;;  %vm75_vm10 = vcmp.lt.s32.totalorder %v39_v7, %v3275_v12  ;;  %vm74_vm11 = vcmp.lt.s32.totalorder %v38_v8, %v3275_v12  ;;  %p3213_p8 = por %p3212_p7, %p3211_p6 }
  0x14   :  { %vm3287_vm12 = vmand %vm60_vm1, %vm77_vm8  ;;  %vm73_vm13 = vcmp.lt.s32.totalorder %v37_v9, %v3275_v12  ;;  %vm72_vm14 = vcmp.lt.s32.totalorder %v36_v10, %v3275_v12  ;;  %vm71_vm15 = vcmp.lt.s32.totalorder %v35_v11, %v3275_v12  ;;  %v34_v14 = vadd.s32 64, %v3255_v2 }
  0x15   :  { %2699 = vmatpush3.msk.msra.mxu0 %vm3287_vm12, %v4343_v15  ;;  %vm3300_vm0 = vmand %vm59_vm2, %vm76_vm9  ;;  %v2365_v17 = vsel %vm3287_vm12, 1.0, %v4381_v1  ;;  %v33_v18 = vadd.s32 56, %v3255_v2  ;;  %v32_v19 = vadd.s32 48, %v3255_v2  ;;  %v3310_v20 = vadd.s32 40, %v3255_v2  ;;  %p3214_p9 = pnand %p3213_p8, %p3207_p5 }
  0x16   :  { %2700 = vmatprep.subr.mxu0 %v4381_v1  ;;  %vm3317_vm1 = vmand %vm58_vm3, %vm75_vm10  ;;  %v3321_v22 = vsub.f32 %v2365_v17, %v2365_v17  ;;  %v2364_v23 = vsel %vm3300_vm0, 1.0, %v4381_v1  ;;  %vm53_vm2 = vcmp.ge.s32.totalorder %v34_v14, %v3265_v5  ;;  %vm70_vm8 = vcmp.lt.s32.totalorder %v34_v14, %v3275_v12 }
  0x17   :  { %2701 = vmatpush3.msk.msra.mxu0 %vm3300_vm0, %v4343_v15  ;;  %vm3335_vm3 = vmand %vm57_vm4, %vm74_vm11  ;;  %v3339_v25 = vsub.f32 %v2364_v23, %v2364_v23  ;;  %v2363_v26 = vsel %vm3317_vm1, 1.0, %v4381_v1  ;;  %vm52_vm9 = vcmp.ge.s32.totalorder %v33_v18, %v3265_v5  ;;  %vm69_vm10 = vcmp.lt.s32.totalorder %v33_v18, %v3275_v12 }
  0x18   :  { %2702 = vmatprep.subr.mxu0 %v4381_v1  ;;  %vm3351_vm4 = vmand %vm56_vm5, %vm73_vm13  ;;  %v3356_v28 = vand.u32 4294901760, %v3321_v22  ;;  %v3358_v29 = vsub.f32 %v2363_v26, %v2363_v26  ;;  %v2362_v30 = vsel %vm3335_vm3, 1.0, %v4381_v1  ;;  %vm51_vm11 = vcmp.ge.s32.totalorder %v32_v19, %v3265_v5 }
  0x19   :  { %2703 = vmatpush3.msk.msra.mxu0 %vm3317_vm1, %v4343_v15  ;;  %vm3371_vm5 = vmand %vm55_vm6, %vm72_vm14  ;;  %v3376_v32 = vand.u32 4294901760, %v3339_v25  ;;  %v3378_v33 = vsub.f32 %v2362_v30, %v2362_v30  ;;  %v2361_v34 = vsel %vm3351_vm4, 1.0, %v4381_v1  ;;  %vm68_vm13 = vcmp.lt.s32.totalorder %v32_v19, %v3275_v12 }
  0x1a   :  { %v4398_v31 = vsel %vm3371_vm5, 4294967295, %v4397_v31  ;;  %2704 = vmatprep.subr.mxu0 %v4381_v1  ;;  %v228_v35 = vsub.f32 %v3321_v22, %v3356_v28  ;;  %vm3391_vm6 = vmand %vm54_vm7, %vm71_vm15  ;;  %v3396_v37 = vand.u32 4294901760, %v3358_v29  ;;  %v3398_v38 = vsub.f32 %v2361_v34, %v2361_v34 }
  0x1b   :  { %4399 = vst [vmem:[#allocation8_spill] sm:$0xff] %v3376_v32  ;;  %v4401_v36 = vsel %vm3391_vm6, 4294967295, %v4400_v36  ;;  %v2360_v39 = vsel %vm3371_vm5, 1.0, %v4381_v1  ;;  %2705 = vmatpush3.msk.msra.mxu0 %vm3335_vm3, %v4343_v15  ;;  %v235_v40 = vsub.f32 %v3339_v25, %v3376_v32  ;;  %v3409_v41 = vand.u32 4294901760, %v3378_v33  ;;  %vm3424_vm14 = vmand %vm53_vm2, %vm70_vm8 }
  0x1c   :  { %4402 = vst [vmem:[#allocation9_spill] sm:$0xff] %v3396_v37  ;;  %v3411_v42 = vsub.f32 %v2360_v39, %v2360_v39  ;;  %vm50_vm7 = vcmp.ge.s32.totalorder %v3310_v20, %v3265_v5  ;;  %2706 = vmatprep.subr.mxu0 %v4381_v1  ;;  %v3416_v43 = vand.u32 4294901760, %v228_v35  ;;  %v242_v44 = vsub.f32 %v3358_v29, %v3396_v37  ;;  %vm3454_vm2 = vmand %vm52_vm9, %vm69_vm10  ;;  %v3573_v35 = vld [vmem:[#allocation2] sm:$0xff] }
  0x1d   :  { %4403 = vst [vmem:[#allocation10_spill] sm:$0xff] %v3409_v41  ;;  %v4405_v45 = vsel %vm3424_vm14, 4294967295, %v4404_v45  ;;  %v3429_v46 = vand.u32 4294901760, %v3398_v38  ;;  %vm67_vm15 = vcmp.lt.s32.totalorder %v3310_v20, %v3275_v12  ;;  %2707 = vmatpush3.msk.msra.mxu0 %vm3351_vm4, %v4343_v15  ;;  %v3436_v47 = vand.u32 4294901760, %v235_v40  ;;  %vm3473_vm8 = vmand %vm51_vm11, %vm68_vm13 }
  0x1e   :  { %v249_v48 = vsub.f32 %v3378_v33, %v3409_v41  ;;  %v3441_v49 = vand.u32 4294901760, %v3411_v42  ;;  %v2359_v50 = vsel %vm3391_vm6, 1.0, %v4381_v1  ;;  %2708 = vmatprep.subr.mxu0 %v4381_v1  ;;  %2734 = vmatpush3.msra.mxu1 %v3416_v43  ;;  %v3448_v51 = vand.u32 4294901760, %v242_v44  ;;  %vm3504_vm11 = vmand %vm50_vm7, %vm67_vm15  ;;  %4428 = vst [vmem:[#allocation22_spill] sm:$0xff] %v3573_v35 }
  0x1f   :  { %4406 = vst [vmem:[#allocation11_spill] sm:$0xff] %v3429_v46  ;;  %v4409_v52 = vmov 0  ;;  %v256_v53 = vsub.f32 %v3398_v38, %v3429_v46  ;;  %v3460_v54 = vsub.f32 %v2359_v50, %v2359_v50  ;;  %v30_v55 = vadd.s32 32, %v3255_v2  ;;  %2709 = vmatpush3.msk.msra.mxu0 %vm3371_vm5, %v4343_v15  ;;  %2735 = vmatprep.subr.mxu1 %v4381_v1 }
  0x20   :  { %4407 = vst [vmem:[#allocation12_spill] sm:$0xff] %v3441_v49  ;;  %4408 = vst [vmem:[#allocation13_spill] sm:$0xff] %v3448_v51  ;;  %v4410_v52 = vsel %vm3454_vm2, 4294967295, %v4409_v52  ;;  %v3467_v56 = vand.u32 4294901760, %v249_v48  ;;  %v4412_v57 = vmov 0  ;;  %v263_v58 = vsub.f32 %v3411_v42, %v3441_v49  ;;  %2710 = vmatprep.subr.mxu0 %v4381_v1  ;;  %2736 = vmatpush3.msra.mxu1 %v3436_v47 }
  0x21   :  { %v4413_v57 = vsel %vm3473_vm8, 4294967295, %v4412_v57  ;;  %v2358_v59 = vsel %vm3424_vm14, 1.0, %v4381_v1  ;;  %v29_v60 = vadd.s32 24, %v3255_v2  ;;  %v3485_v61 = vand.u32 4294901760, %v256_v53  ;;  %2711 = vmatpush3.msk.msra.mxu0 %vm3391_vm6, %v4343_v15  ;;  %2737 = vmatprep.subr.mxu1 %v4381_v1 }
  0x22   :  { %4411 = vst [vmem:[#allocation14_spill] sm:$0xff] %v3467_v56  ;;  %v3488_v62 = vand.u32 4294901760, %v3460_v54  ;;  %vm66_vm10 = vcmp.lt.s32.totalorder %v30_v55, %v3275_v12  ;;  %v3496_v63 = vand.u32 4294901760, %v263_v58  ;;  %v3508_v4 = vsub.f32 %v2358_v59, %v2358_v59  ;;  %2712 = vmatprep.subr.mxu0 %v4381_v1  ;;  %2738 = vmatpush3.msra.mxu1 %v3448_v51  ;;  %v4471_v13 = vld [vmem:[#allocation8_spill] sm:$0xff] }
  0x23   :  { %4414 = vst [vmem:[#allocation15_spill] sm:$0xff] %v3485_v61  ;;  %vm48_vm13 = vcmp.ge.s32.totalorder %v29_v60, %v3265_v5  ;;  %vm65_vm9 = vcmp.lt.s32.totalorder %v29_v60, %v3275_v12  ;;  %v2357_v7 = vsel %vm3454_vm2, 1.0, %v4381_v1  ;;  %v28_v8 = vadd.s32 16, %v3255_v2  ;;  %2713 = vmatpush3.msk.msra.mxu0 %vm3424_vm14, %v4343_v15  ;;  %2739 = vmatprep.subr.mxu1 %v4381_v1  ;;  %v4472_v16 = vld [vmem:[#allocation9_spill] sm:$0xff] }
  0x24   :  { %4415 = vst [vmem:[#allocation16_spill] sm:$0xff] %v3488_v62  ;;  %4416 = vst [vmem:[#allocation17_spill] sm:$0xff] %v3496_v63  ;;  %v270_v6 = vsub.f32 %v3460_v54, %v3488_v62  ;;  %v2356_v9 = vsel %vm3473_vm8, 1.0, %v4381_v1  ;;  %vm4419_vm7 = vcmp.ge.s32.totalorder %v30_v55, %v3265_v5  ;;  %v4420_v10 = vmov 0  ;;  %2714 = vmatprep.subr.mxu0 %v4381_v1  ;;  %2740 = vmatpush3.msra.mxu1 %v3467_v56  ;;  %v4473_v21 = vld [vmem:[#allocation10_spill] sm:$0xff] }
  0x25   :  { %vm3531_vm15 = vmand %vm4419_vm7, %vm66_vm10  ;;  %v3536_v11 = vand.u32 4294901760, %v3508_v4  ;;  %v3538_v14 = vsub.f32 %v2357_v7, %v2357_v7  ;;  %v3540_v17 = vsub.f32 %v2356_v9, %v2356_v9  ;;  %v27_v18 = vadd.s32 8, %v3255_v2  ;;  %2715 = vmatpush3.msk.msra.mxu0 %vm3454_vm2, %v4343_v15  ;;  %2741 = vmatprep.subr.mxu1 %v4381_v1 }
  0x26   :  { %v4421_v10 = vsel %vm3531_vm15, 4294967295, %v4420_v10  ;;  %v3545_v19 = vand.u32 4294901760, %v270_v6  ;;  %vm47_vm10 = vcmp.ge.s32.totalorder %v28_v8, %v3265_v5  ;;  %vm64_vm7 = vcmp.lt.s32.totalorder %v28_v8, %v3275_v12  ;;  %vm3562_vm14 = vmand %vm48_vm13, %vm65_vm9  ;;  %2716 = vmatprep.subr.mxu0 %v4381_v1  ;;  %2742 = vmatpush3.msra.mxu1 %v3485_v61 }
  0x27   :  { %4422 = vst [vmem:[#allocation18_spill] sm:$0xff] %v3536_v11  ;;  %v2355_v20 = vsel %vm3504_vm11, 1.0, %v4381_v1  ;;  %v277_v23 = vsub.f32 %v3508_v4, %v3536_v11  ;;  %v4424_v26 = vmov 0  ;;  %v3567_v30 = vand.u32 4294901760, %v3538_v14  ;;  %vm3577_vm6 = vmand %vm47_vm10, %vm64_vm7  ;;  %2717 = vmatpush3.msk.msra.mxu0 %vm3473_vm8, %v4343_v15  ;;  %2743 = vmatprep.subr.mxu1 %v4381_v1  ;;  %v4476_v24 = vld [vmem:[#allocation12_spill] sm:$0xff] }
  0x28   :  { %4423 = vst [vmem:[#allocation19_spill] sm:$0xff] %v3545_v19  ;;  %v4425_v26 = vsel %vm3562_vm14, 4294967295, %v4424_v26  ;;  %v3570_v34 = vand.u32 4294901760, %v3540_v17  ;;  %vm46_vm2 = vcmp.ge.s32.totalorder %v27_v18, %v3265_v5  ;;  %v4429_v39 = vmov 0  ;;  %2718 = vmatprep.subr.mxu0 %v4381_v1  ;;  %2744 = vmatpush3.msra.mxu1 %v3496_v63 }
  0x29   :  { %4426 = vst [vmem:[#allocation20_spill] sm:$0xff] %v3567_v30  ;;  %v4430_v39 = vsel %vm3577_vm6, 4294967295, %v4429_v39  ;;  %vm63_vm9 = vcmp.lt.s32.totalorder %v27_v18, %v3275_v12  ;;  %v3582_v40 = vsub.f32 %v2355_v20, %v2355_v20  ;;  %vm45_vm13 = vcmp.ge.s32.totalorder %v3255_v2, %v3265_v5  ;;  %2719 = vmatpush3.msk.msra.mxu0 %vm3504_vm11, %v4343_v15 }
  0x2a   :  { %4427 = vst [vmem:[#allocation21_spill] sm:$0xff] %v3570_v34  ;;  %v2354_v44 = vsel %vm3531_vm15, 1.0, %v4381_v1  ;;  %v3593_v48 = vand.u32 4294901760, %v277_v23  ;;  %v284_v50 = vsub.f32 %v3538_v14, %v3567_v30  ;;  %v291_v53 = vsub.f32 %v3540_v17, %v3570_v34  ;;  %vm3599_vm10 = vmand %vm46_vm2, %vm63_vm9  ;;  %2745 = vmatprep.subr.mxu1 %v4381_v1  ;;  %2720 = vmatprep.subr.mxu0 %v4381_v1 }
  0x2b   :  { %v4432_v5 = vmov 0  ;;  %vm62_vm7 = vcmp.lt.s32.totalorder %v3255_v2, %v3275_v12  ;;  %v3608_v55 = vand.u32 4294901760, %v3582_v40  ;;  %v3614_v59 = vsub.f32 %v2354_v44, %v2354_v44  ;;  %2746 = vmatpush3.msra.mxu1 %v3545_v19  ;;  %2721 = vmatpush3.msk.msra.mxu0 %vm3531_vm15, %v4343_v15 }
  0x2c   :  { %4431 = vst [vmem:[#allocation23_spill] sm:$0xff] %v3593_v48  ;;  %v4433_v5 = vsel %vm3599_vm10, 4294967295, %v4432_v5  ;;  %vm3610_vm8 = vmand %vm45_vm13, %vm62_vm7  ;;  %v3617_v60 = vand.u32 4294901760, %v3573_v35  ;;  %v2353_v12 = vsel %vm3562_vm14, 1.0, %v4381_v1  ;;  %v3626_v6 = vand.u32 4294901760, %v284_v50  ;;  %2747 = vmatprep.subr.mxu1 %v4381_v1  ;;  %2722 = vmatprep.subr.mxu0 %v4381_v1 }
  0x2d   :  { %4434 = vst [vmem:[#allocation24_spill] sm:$0xff] %v3608_v55  ;;  %v3628_v7 = vsub.f32 %v2353_v12, %v2353_v12  ;;  %v2352_v8 = vsel %vm3577_vm6, 1.0, %v4381_v1  ;;  %v298_v9 = vsub.f32 %v3582_v40, %v3608_v55  ;;  %v3638_v18 = vand.u32 4294901760, %v3614_v59  ;;  %2748 = vmatpush3.msra.mxu1 %v3593_v48 }
  0x2e   :  { %4437 = vst [vmem:[#allocation25_spill] sm:$0xff] %v3626_v6  ;;  %v3642_v20 = vsub.f32 %v3573_v35, %v3617_v60  ;;  %v3644_v23 = vsub.f32 %v2352_v8, %v2352_v8  ;;  %v2351_v50 = vsel %vm3599_vm10, 1.0, %v4381_v1  ;;  %v2350_v12 = vsel %vm3610_vm8, 1.0, %v4381_v1  ;;  %2749 = vmatprep.subr.mxu1 %v4381_v1  ;;  %v4478_v27 = vld [vmem:[#allocation18_spill] sm:$0xff] }
  0x2f   :  { %4438 = vst [vmem:[#allocation26_spill] sm:$0xff] %v3638_v18  ;;  %v3651_v44 = vand.u32 4294901760, %v3628_v7  ;;  %v3661_v8 = vand.u32 4294901760, %v291_v53  ;;  %v305_v15 = vsub.f32 %v3614_v59, %v3638_v18  ;;  %v4442_v63 = vmov 1.0   ;;  %2750 = vmatpush3.msra.mxu1 %v3626_v6 }
  0x30   :  { %v4352_v35 = vand.u32 4294901760, %v3642_v20  ;;  %v3667_v19 = vand.u32 4294901760, %v3644_v23  ;;  %2723 = vmatpush3.msk.msra.mxu0 %vm3562_vm14, %v4442_v63  ;;  %v3673_v61 = vsub.f32 %v2351_v50, %v2351_v50  ;;  %v3675_v56 = vsub.f32 %v2350_v12, %v2350_v12  ;;  %2751 = vmatprep.subr.mxu1 %v4381_v1 }
  0x31   :  { %4439 = vst [vmem:[#allocation27_spill] sm:$0xff] %v3651_v44  ;;  %4440 = vst [vmem:[#allocation28_spill] sm:$0xff] %v3661_v8  ;;  %2724 = vmatprep.subr.mxu0 %v4381_v1  ;;  %v3679_v53 = vand.u32 4294901760, %v298_v9  ;;  %v312_v51 = vsub.f32 %v3628_v7, %v3651_v44  ;;  %2752 = vmatpush3.msra.mxu1 %v3661_v8  ;;  %v3695_v9 = vand.u32 4294901760, %v305_v15  ;;  %vm4446_vm2 = vnez %v4401_v36 }
  0x32   :  { %4441 = vst [vmem:[#allocation29_spill] sm:$0xff] %v3667_v19  ;;  %v217_v48 = vsub.f32 %v3642_v20, %v4352_v35  ;;  %2725 = vmatpush3.msk.msra.mxu0 %vm3577_vm6, %v4442_v63  ;;  %v3691_v50 = vand.u32 4294901760, %v3673_v61  ;;  %v319_v12 = vsub.f32 %v3644_v23, %v3667_v19  ;;  %v3700_v35 = vand.u32 4294901760, %v3675_v56  ;;  %2753 = vmatprep.subr.mxu1 %v4381_v1 }
  0x33   :  { %4443 = vst [vmem:[#allocation30_spill] sm:$0xff] %v3679_v53  ;;  %2726 = vmatprep.subr.mxu0 %v4381_v1  ;;  %2754 = vmatpush3.msra.mxu1 %v3679_v53  ;;  %v3708_v8 = vand.u32 4294901760, %v312_v51  ;;  %vm4447_vm9 = vnez %v4405_v45  ;;  %vm4448_vm13 = vnez %v4410_v52  ;;  %vm4449_vm7 = vnez %v4413_v57 }
  0x34   :  { %4444 = vst [vmem:[#allocation31_spill] sm:$0xff] %v3691_v50  ;;  %4445 = vst [vmem:[#allocation32_spill] sm:$0xff] %v3700_v35  ;;  %2727 = vmatpush3.msk.msra.mxu0 %vm3599_vm10, %v4442_v63  ;;  %v218_v6 = vand.u32 4294901760, %v217_v48  ;;  %v326_v15 = vsub.f32 %v3673_v61, %v3691_v50  ;;  %2755 = vmatprep.subr.mxu1 %v4381_v1  ;;  %v3718_v48 = vand.u32 4294901760, %v319_v12 }
  0x35   :  { %2728 = vmatprep.subr.mxu0 %v4381_v1  ;;  %2756 = vmatpush3.msra.mxu1 %v3695_v9  ;;  %v333_v53 = vsub.f32 %v3675_v56, %v3700_v35 }
  0x36   :  { %2729 = vmatpush3.msk.msra.mxu0 %vm3610_vm8, %v4442_v63  ;;  %2757 = vmatprep.subr.mxu1 %v4381_v1  ;;  %v3725_v51 = vand.u32 4294901760, %v326_v15 }
  0x37   :  { %2768 = vmatprep.subr.mxu0 %v4381_v1  ;;  %2731 = vmatmul.mubr.f32.vlgmr.msra.gmra.mxu0 %v218_v6  ;;  %v3731_v12 = vand.u32 4294901760, %v333_v53  ;;  %v4451_v6 = vand.u32 4294901760, %v3642_v20 }
  0x38   :  { %2769 = vmatpush3.msra.mxu0 %v3321_v22  ;;  %2758 = vmatpush3.msra.mxu1 %v3708_v8  ;;  %v4483_v36 = vld [vmem:[#allocation27_spill] sm:$0xff] }
  0x39   :  { %2770 = vmatprep.subr.mxu0 %v4381_v1  ;;  %2759 = vmatprep.subr.mxu1 %v4381_v1 }
  0x3a   :  { %2771 = vmatpush3.msra.mxu0 %v3339_v25  ;;  %2760 = vmatpush3.msra.mxu1 %v3718_v48 }
  0x3b   :  { %2772 = vmatprep.subr.mxu0 %v4381_v1  ;;  %2761 = vmatprep.subr.mxu1 %v4381_v1  ;;  %v4486_v45 = vld [vmem:[#allocation31_spill] sm:$0xff] }
  0x3c   :  { %2773 = vmatpush3.msra.mxu0 %v3358_v29  ;;  %2762 = vmatpush3.msra.mxu1 %v3725_v51 }
  0x3d   :  { %2774 = vmatprep.subr.mxu0 %v4381_v1  ;;  %2763 = vmatprep.subr.mxu1 %v4381_v1 }
  0x3e   :  { %2775 = vmatpush3.msra.mxu0 %v3378_v33  ;;  %2764 = vmatpush3.msra.mxu1 %v3731_v12 }
  0x3f   :  { %2776 = vmatprep.subr.mxu0 %v4381_v1  ;;  %2766 = vmatmul.mubr.f32.vlgmr.msra.gmra.mxu1 %v3617_v60 }
  0x40   :  { %2777 = vmatpush3.msra.mxu0 %v3398_v38  ;;  %2803 = vmatprep.subr.mxu1 %v4381_v1 }
  0x41   :  { %2778 = vmatprep.subr.mxu0 %v4381_v1  ;;  %2804 = vmatpush3.msk.msra.mxu1 %vm3287_vm12, %v4442_v63 }
  0x42   :  { %2779 = vmatpush3.msra.mxu0 %v3411_v42  ;;  %2805 = vmatprep.subr.mxu1 %v4381_v1 }
  0x43   :  { %2780 = vmatprep.subr.mxu0 %v4381_v1  ;;  %2806 = vmatpush3.msk.msra.mxu1 %vm3300_vm0, %v4442_v63 }
  0x44   :  { %2781 = vmatpush3.msra.mxu0 %v3460_v54  ;;  %2807 = vmatprep.subr.mxu1 %v4381_v1 }
  0x45   :  { %2782 = vmatprep.subr.mxu0 %v4381_v1  ;;  %2808 = vmatpush3.msk.msra.mxu1 %vm3317_vm1, %v4442_v63 }
  0x46   :  { %2783 = vmatpush3.msra.mxu0 %v3508_v4  ;;  %2809 = vmatprep.subr.mxu1 %v4381_v1 }
  0x47   :  { %2784 = vmatprep.subr.mxu0 %v4381_v1  ;;  %2810 = vmatpush3.msk.msra.mxu1 %vm3335_vm3, %v4442_v63 }
  0x48   :  { %2785 = vmatpush3.msra.mxu0 %v3538_v14  ;;  %2811 = vmatprep.subr.mxu1 %v4381_v1 }
  0x49   :  { %2786 = vmatprep.subr.mxu0 %v4381_v1  ;;  %2812 = vmatpush3.msk.msra.mxu1 %vm3351_vm4, %v4442_v63 }
  0x4a   :  { %2787 = vmatpush3.msra.mxu0 %v3540_v17  ;;  %2813 = vmatprep.subr.mxu1 %v4381_v1 }
  0x4b   :  { %2788 = vmatprep.subr.mxu0 %v4381_v1  ;;  %2814 = vmatpush3.msk.msra.mxu1 %vm3371_vm5, %v4442_v63 }
  0x4c   :  { %2789 = vmatpush3.msra.mxu0 %v3582_v40  ;;  %2815 = vmatprep.subr.mxu1 %v4381_v1 }
  0x4d   :  { %2790 = vmatprep.subr.mxu0 %v4381_v1  ;;  %2816 = vmatpush3.msk.msra.mxu1 %vm4446_vm2, %v4442_v63 }
  0x4e   :  { %2791 = vmatpush3.msra.mxu0 %v3614_v59  ;;  %2817 = vmatprep.subr.mxu1 %v4381_v1 }
  0x4f   :  { %2792 = vmatprep.subr.mxu0 %v4381_v1  ;;  %2818 = vmatpush3.msk.msra.mxu1 %vm4447_vm9, %v4442_v63 }
  0x50   :  { %2793 = vmatpush3.msra.mxu0 %v3628_v7  ;;  %2819 = vmatprep.subr.mxu1 %v4381_v1 }
  0x51   :  { %2794 = vmatprep.subr.mxu0 %v4381_v1  ;;  %2820 = vmatpush3.msk.msra.mxu1 %vm4448_vm13, %v4442_v63  ;;  %vm4450_vm13 = vmmov 0  }
  0x52   :  { %2795 = vmatpush3.msra.mxu0 %v3644_v23  ;;  %2821 = vmatprep.subr.mxu1 %v4381_v1 }
  0x53   :  { %2796 = vmatprep.subr.mxu0 %v4381_v1  ;;  %2822 = vmatpush3.msk.msra.mxu1 %vm4449_vm7, %v4442_v63 }
  0x54   :  { %2797 = vmatpush3.msra.mxu0 %v3673_v61  ;;  %2823 = vmatprep.subr.mxu1 %v4381_v1 }
  0x55   :  { %2798 = vmatprep.subr.mxu0 %v4381_v1  ;;  %2824 = vmatpush3.msk.msra.mxu1 %vm3504_vm11, %v4442_v63 }
  0x56   :  { %2799 = vmatpush3.msra.mxu0 %v3675_v56  ;;  %2800 = vmatprep.mubr.msk.f32.mxu0 %vm4450_vm13, %v4381_v1 }
  0x57   :  { %2825 = vmatprep.subr.mxu1 %v4381_v1  ;;  %2801 = vmatmul.mubr.f32.vlgmr.msra.gmra.mxu0 %v3642_v20  ;;  %v126_v20 = vmul.u32 32, %v3255_v2 }
  0x58   :  { %2826 = vmatpush3.msk.msra.mxu1 %vm3531_vm15, %v4442_v63  ;;  %2838 = vmatprep.subr.mxu0 %v4381_v1 }
  0x59   :  { %2827 = vmatprep.subr.mxu1 %v4381_v1  ;;  %2839 = vmatpush3.msra.mxu0 %v3356_v28  ;;  %v128_v53 = vadd.s32 32, %v126_v20 }
  0x5a   :  { %2828 = vmatpush3.msk.msra.mxu1 %vm3562_vm14, %v4442_v63  ;;  %2840 = vmatprep.subr.mxu0 %v4381_v1 }
  0x5b   :  { %2829 = vmatprep.subr.mxu1 %v4381_v1  ;;  %2841 = vmatpush3.msra.mxu0 %v3376_v32 }
  0x5c   :  { %2830 = vmatpush3.msk.msra.mxu1 %vm3577_vm6, %v4442_v63  ;;  %2842 = vmatprep.subr.mxu0 %v4381_v1 }
  0x5d   :  { %2831 = vmatprep.subr.mxu1 %v4381_v1  ;;  %2843 = vmatpush3.msra.mxu0 %v3396_v37 }
  0x5e   :  { %2832 = vmatpush3.msk.msra.mxu1 %vm3599_vm10, %v4442_v63  ;;  %2844 = vmatprep.subr.mxu0 %v4381_v1 }
  0x5f   :  { %2833 = vmatprep.subr.mxu1 %v4381_v1  ;;  %2845 = vmatpush3.msra.mxu0 %v3409_v41 }
  0x60   :  { %2834 = vmatpush3.msk.msra.mxu1 %vm3610_vm8, %v4442_v63  ;;  %2835 = vmatprep.mubr.msk.f32.mxu1 %vm4450_vm13, %v4381_v1 }
  0x61   :  { %2846 = vmatprep.subr.mxu0 %v4381_v1  ;;  %2836 = vmatmul.mubr.f32.vlgmr.msra.gmra.mxu1 %v4451_v6 }
  0x62   :  { %2847 = vmatpush3.msra.mxu0 %v3429_v46  ;;  %2873 = vmatprep.subr.mxu1 %v4381_v1 }
  0x63   :  { %2848 = vmatprep.subr.mxu0 %v4381_v1  ;;  %2874 = vmatpush3.msk.msra.mxu1 %vm3287_vm12, %v4442_v63 }
  0x64   :  { %2849 = vmatpush3.msra.mxu0 %v3441_v49  ;;  %2875 = vmatprep.subr.mxu1 %v4381_v1 }
  0x65   :  { %2850 = vmatprep.subr.mxu0 %v4381_v1  ;;  %2876 = vmatpush3.msk.msra.mxu1 %vm3300_vm0, %v4442_v63 }
  0x66   :  { %2851 = vmatpush3.msra.mxu0 %v3488_v62  ;;  %2877 = vmatprep.subr.mxu1 %v4381_v1 }
  0x67   :  { %2852 = vmatprep.subr.mxu0 %v4381_v1  ;;  %2878 = vmatpush3.msk.msra.mxu1 %vm3317_vm1, %v4442_v63 }
  0x68   :  { %2853 = vmatpush3.msra.mxu0 %v3536_v11  ;;  %2879 = vmatprep.subr.mxu1 %v4381_v1 }
  0x69   :  { %2854 = vmatprep.subr.mxu0 %v4381_v1  ;;  %2880 = vmatpush3.msk.msra.mxu1 %vm3335_vm3, %v4442_v63 }
  0x6a   :  { %2855 = vmatpush3.msra.mxu0 %v3567_v30  ;;  %2881 = vmatprep.subr.mxu1 %v4381_v1 }
  0x6b   :  { %2856 = vmatprep.subr.mxu0 %v4381_v1  ;;  %2882 = vmatpush3.msk.msra.mxu1 %vm3351_vm4, %v4442_v63 }
  0x6c   :  { %2857 = vmatpush3.msra.mxu0 %v3570_v34  ;;  %2883 = vmatprep.subr.mxu1 %v4381_v1 }
  0x6d   :  { %2858 = vmatprep.subr.mxu0 %v4381_v1  ;;  %2884 = vmatpush3.msk.msra.mxu1 %vm3371_vm5, %v4442_v63  ;;  %vm4452_vm5 = vnez %v4410_v52 }
  0x6e   :  { %2859 = vmatpush3.msra.mxu0 %v3608_v55  ;;  %2885 = vmatprep.subr.mxu1 %v4381_v1 }
  0x6f   :  { %2860 = vmatprep.subr.mxu0 %v4381_v1  ;;  %2886 = vmatpush3.msk.msra.mxu1 %vm4446_vm2, %v4442_v63 }
  0x70   :  { %2861 = vmatpush3.msra.mxu0 %v3638_v18  ;;  %2887 = vmatprep.subr.mxu1 %v4381_v1 }
  0x71   :  { %2862 = vmatprep.subr.mxu0 %v4381_v1  ;;  %2888 = vmatpush3.msk.msra.mxu1 %vm4447_vm9, %v4442_v63 }
  0x72   :  { %2863 = vmatpush3.msra.mxu0 %v3651_v44  ;;  %2889 = vmatprep.subr.mxu1 %v4381_v1 }
  0x73   :  { %2864 = vmatprep.subr.mxu0 %v4381_v1  ;;  %2890 = vmatpush3.msk.msra.mxu1 %vm4452_vm5, %v4442_v63 }
  0x74   :  { %2865 = vmatpush3.msra.mxu0 %v3667_v19  ;;  %2891 = vmatprep.subr.mxu1 %v4381_v1 }
  0x75   :  { %2866 = vmatprep.subr.mxu0 %v4381_v1  ;;  %2892 = vmatpush3.msk.msra.mxu1 %vm4449_vm7, %v4442_v63 }
  0x76   :  { %2867 = vmatpush3.msra.mxu0 %v3691_v50  ;;  %2893 = vmatprep.subr.mxu1 %v4381_v1 }
  0x77   :  { %2868 = vmatprep.subr.mxu0 %v4381_v1  ;;  %2894 = vmatpush3.msk.msra.mxu1 %vm3504_vm11, %v4442_v63 }
  0x78   :  { %2869 = vmatpush3.msra.mxu0 %v3700_v35  ;;  %2870 = vmatprep.mubr.msk.f32.mxu0 %vm4450_vm13, %v4381_v1 }
  0x79   :  { %2895 = vmatprep.subr.mxu1 %v4381_v1  ;;  %2871 = vmatmul.mubr.f32.vlgmr.msra.gmra.mxu0 %v3617_v60 }
  0x7a   :  { %2896 = vmatpush3.msk.msra.mxu1 %vm3531_vm15, %v4442_v63  ;;  %2905 = vmatprep.mubr.msk.f32.mxu1 %vm4450_vm13, %v4381_v1  ;;  %vm4385_vm15 = vcmask 1043456  }
  0x7b   :  { %2897 = vmatprep.subr.mxu1 %v4381_v1  ;;  %2908 = vmatprep.subr.mxu0 %v4381_v1 }
  0x7c   :  { %2898 = vmatpush3.msk.msra.mxu1 %vm3562_vm14, %v4442_v63  ;;  %2910 = vmatprep.mubr.msk.f32.mxu0 %vm4450_vm13, %v4381_v1 }
  0x7d   :  { %2899 = vmatprep.subr.mxu1 %v4381_v1 }
  0x7e   :  { %2900 = vmatpush3.msk.msra.mxu1 %vm3577_vm6, %v4442_v63  ;;  %vm127_vm6 = vcmp.ge.s32.totalorder %v3257_v3, %v126_v20 }
  0x7f   :  { %2901 = vmatprep.subr.mxu1 %v4381_v1 }
  0x80   :  { %2902 = vmatpush3.msk.msra.mxu1 %vm3599_vm10, %v4442_v63  ;;  %vm129_vm10 = vcmp.lt.s32.totalorder %v3257_v3, %v128_v53 }
  0x81   :  { %2903 = vmatprep.subr.mxu1 %v4381_v1  ;;  %vm130_vm14 = vmand %vm127_vm6, %vm129_vm10  ;;  %vm4384_vm6 = vcmask 31744   ;;  %vm4465_vm10 = vnez %v4421_v10 }
  0x82   :  { %2904 = vmatpush3.msk.msra.mxu1 %vm3610_vm8, %v4442_v63  ;;  %v3949_v15 = vsel %vm130_vm14, 1.0, %v4381_v1  ;;  %vm4462_vm14 = vnez %v4398_v31  ;;  %v4481_v31 = vld [vmem:[#allocation24_spill] sm:$0xff] }
  0x83   :  { %2906 = vmatmul.mubr.f32.vlgmr.msra.gmra.mxu1 %v3617_v60  ;;  %2913 = vmatprep.subr.mxu1 %v4381_v1  ;;  %v781_v60 = vsel %vm4385_vm15, %v3949_v15, 0 }
  0x84   :  { %2915 = vmatprep.mubr.msk.f32.mxu1 %vm4450_vm13, %v4381_v1  ;;  %2909 = vmatpush3.msk.msra.mxu0 %vm4385_vm15, %v3949_v15  ;;  %v3955_v6 = vsub.f32 %v781_v60, %v781_v60 }
  0x85   :  { %2918 = vmatprep.subr.mxu0 %v4381_v1 }
  0x86   :  { %v3959_v2 = vand.u32 4294901760, %v3955_v6 }
  0x88   :  { %v893_v3 = vsub.f32 %v3955_v6, %v3959_v2 }
  0x8a   :  { %v3963_v20 = vand.u32 4294901760, %v893_v3 }
  0x8c   :  { %4453 = vst [vmem:[#allocation33_spill] sm:$0xff] %v3963_v20  ;;  %2914 = vmatpush3.msra.mxu1 %v3963_v20 }
  0x8d   :  { %2923 = vmatprep.subr.mxu1 %v4381_v1 }
  0xf7   :  { %v220_v53 = vpop.f32.mrf.mxu0 }
  0xf9   :  { %v2732_v35 = vpop.f32.mrf.mxu0 }
  0xff   :  { %v371_v50 = vpop.f32.mrf.mxu1 }
 0x100   :  { %v372_v11 = vadd.f32 %v371_v50, %v220_v53 }
 0x101   :  { %v2767_v19 = vpop.f32.mrf.mxu1 }
 0x102   :  { %v4454_v19 = vmov 0.0  }
 0x117   :  { %v475_v60 = vpop.f32.mrf.mxu0 }
 0x118   :  { %v476_v62 = vadd.f32 %v475_v60, %v372_v11  ;;  %v4463_v11 = vld [vmem:[#allocation28_spill] sm:$0xff] }
 0x119   :  { %v2802_v44 = vpop.f32.mrf.mxu0 }
 0x121   :  { %v564_v18 = vpop.f32.mrf.mxu1 }
 0x122   :  { %v565_v49 = vadd.f32 %v564_v18, %v476_v62  ;;  %v4461_v62 = vld [vmem:[#allocation25_spill] sm:$0xff] }
 0x123   :  { %v2837_v55 = vpop.f32.mrf.mxu1 }
 0x139   :  { %v683_v34 = vpop.f32.mrf.mxu0 }
 0x13a   :  { %v684_v46 = vadd.f32 %v683_v34, %v565_v49  ;;  %v4464_v34 = vld [vmem:[#allocation30_spill] sm:$0xff] }
 0x13b   :  { %v2872_v30 = vpop.f32.mrf.mxu0 }
 0x143   :  { %v770_v3 = vpop.f32.mrf.mxu1 }
 0x144   :  { %v771_v41 = vadd.f32 %v770_v3, %v684_v46  ;;  %v4459_v46 = vld [vmem:[#allocation19_spill] sm:$0xff] }
 0x145   :  { %v2907_v20 = vpop.f32.mrf.mxu1 }
 0x146   :  { %v774_v37 = vmul.f32 0.03125, %v771_v41  ;;  %v4456_v41 = vld [vmem:[#allocation14_spill] sm:$0xff] }
 0x148   :  { %v777_v1 = vsel %vm4384_vm6, %v774_v37, 0  ;;  %vm4466_vm6 = vnez %v4425_v26 }
 0x149   :  { %v849_v35 = vand.u32 4294901760, %v777_v1 }
 0x14b   :  { %v850_v32 = vsub.f32 %v777_v1, %v849_v35  ;;  %2916 = vmatmul.mubr.f32.vlgmr.msra.gmra.mxu1 %v849_v35  ;;  %v4455_v1 = vld [vmem:[#allocation13_spill] sm:$0xff] }
 0x14c   :  { %2924 = vmatpush3.msk.msra.mxu1 %vm4385_vm15, %v3949_v15  ;;  %2925 = vmatprep.mubr.msk.f32.mxu1 %vm4450_vm13, %v4454_v19 }
 0x14d   :  { %v851_v30 = vand.u32 4294901760, %v850_v32  ;;  %2933 = vmatprep.subr.mxu1 %v4454_v19 }
 0x14f   :  { %2926 = vmatmul.mubr.f32.vlgmr.msra.gmra.mxu1 %v851_v30  ;;  %v852_v49 = vsub.f32 %v850_v32, %v851_v30 }
 0x150   :  { %2934 = vmatpush3.msk.msra.mxu1 %vm4385_vm15, %v3949_v15  ;;  %2935 = vmatprep.mubr.msk.f32.mxu1 %vm4450_vm13, %v4454_v19  ;;  %vm4467_vm15 = vnez %v4430_v39 }
 0x151   :  { %v853_v37 = vand.u32 4294901760, %v852_v49  ;;  %2973 = vmatprep.subr.mxu1 %v4454_v19 }
 0x153   :  { %2911 = vmatmul.mubr.f32.vlgmr.msra.gmra.mxu0 %v853_v37  ;;  %2936 = vmatmul.mubr.f32.vlgmr.msra.gmra.mxu1 %v849_v35 }
 0x154   :  { %2919 = vmatpush3.msra.mxu0 %v3955_v6  ;;  %2920 = vmatprep.mubr.msk.f32.mxu0 %vm4450_vm13, %v4454_v19 }
 0x155   :  { %2928 = vmatprep.subr.mxu0 %v4454_v19  ;;  %2974 = vmatpush3.msra.mxu1 %v3416_v43  ;;  %v4458_v43 = vld [vmem:[#allocation17_spill] sm:$0xff] }
 0x156   :  { %2975 = vmatprep.subr.mxu1 %v4454_v19  ;;  %3005 = vmatprep.mubr.msk.f32.mxu1 %vm4450_vm13, %v4454_v19 }
 0x157   :  { %2921 = vmatmul.mubr.f32.vlgmr.msra.gmra.mxu0 %v850_v32  ;;  %2976 = vmatpush3.msra.mxu1 %v3436_v47  ;;  %v4457_v32 = vld [vmem:[#allocation15_spill] sm:$0xff] }
 0x158   :  { %2929 = vmatpush3.msra.mxu0 %v3959_v2  ;;  %2930 = vmatprep.mubr.msk.f32.mxu0 %vm4450_vm13, %v4454_v19  ;;  %v4460_v47 = vld [vmem:[#allocation23_spill] sm:$0xff] }
 0x159   :  { %2977 = vmatprep.subr.mxu1 %v4454_v19  ;;  %2938 = vmatprep.subr.mxu0 %v4454_v19 }
 0x15a   :  { %2978 = vmatpush3.msra.mxu1 %v4455_v1  ;;  %v4469_v1 = vld [vmem:[#allocation22_spill] sm:$0xff] }
 0x15b   :  { %2931 = vmatmul.mubr.f32.vlgmr.msra.gmra.mxu0 %v849_v35  ;;  %2979 = vmatprep.subr.mxu1 %v4454_v19 }
 0x15c   :  { %2980 = vmatpush3.msra.mxu1 %v4456_v41  ;;  %2939 = vmatpush3.msk.msra.mxu0 %vm3287_vm12, %v4442_v63 }
 0x15d   :  { %2981 = vmatprep.subr.mxu1 %v4454_v19  ;;  %2940 = vmatprep.subr.mxu0 %v4454_v19 }
 0x15e   :  { %2982 = vmatpush3.msra.mxu1 %v4457_v32  ;;  %2941 = vmatpush3.msk.msra.mxu0 %vm3300_vm0, %v4442_v63 }
 0x15f   :  { %2983 = vmatprep.subr.mxu1 %v4454_v19  ;;  %2942 = vmatprep.subr.mxu0 %v4454_v19 }
 0x160   :  { %2984 = vmatpush3.msra.mxu1 %v4458_v43  ;;  %2943 = vmatpush3.msk.msra.mxu0 %vm3317_vm1, %v4442_v63 }
 0x161   :  { %2985 = vmatprep.subr.mxu1 %v4454_v19  ;;  %2944 = vmatprep.subr.mxu0 %v4454_v19 }
 0x162   :  { %2986 = vmatpush3.msra.mxu1 %v4459_v46  ;;  %2945 = vmatpush3.msk.msra.mxu0 %vm3335_vm3, %v4442_v63 }
 0x163   :  { %2987 = vmatprep.subr.mxu1 %v4454_v19  ;;  %2946 = vmatprep.subr.mxu0 %v4454_v19 }
 0x164   :  { %2988 = vmatpush3.msra.mxu1 %v4460_v47  ;;  %2947 = vmatpush3.msk.msra.mxu0 %vm3351_vm4, %v4442_v63 }
 0x165   :  { %2989 = vmatprep.subr.mxu1 %v4454_v19  ;;  %2948 = vmatprep.subr.mxu0 %v4454_v19 }
 0x166   :  { %2990 = vmatpush3.msra.mxu1 %v4461_v62  ;;  %2949 = vmatpush3.msk.msra.mxu0 %vm4462_vm14, %v4442_v63 }
 0x167   :  { %2991 = vmatprep.subr.mxu1 %v4454_v19  ;;  %2950 = vmatprep.subr.mxu0 %v4454_v19 }
 0x168   :  { %2992 = vmatpush3.msra.mxu1 %v4463_v11  ;;  %2951 = vmatpush3.msk.msra.mxu0 %vm4446_vm2, %v4442_v63 }
 0x169   :  { %2993 = vmatprep.subr.mxu1 %v4454_v19  ;;  %2952 = vmatprep.subr.mxu0 %v4454_v19 }
 0x16a   :  { %2994 = vmatpush3.msra.mxu1 %v4464_v34  ;;  %2953 = vmatpush3.msk.msra.mxu0 %vm4447_vm9, %v4442_v63 }
 0x16b   :  { %2995 = vmatprep.subr.mxu1 %v4454_v19  ;;  %2954 = vmatprep.subr.mxu0 %v4454_v19 }
 0x16c   :  { %2996 = vmatpush3.msra.mxu1 %v3695_v9  ;;  %2955 = vmatpush3.msk.msra.mxu0 %vm4452_vm5, %v4442_v63 }
 0x16d   :  { %2997 = vmatprep.subr.mxu1 %v4454_v19  ;;  %2956 = vmatprep.subr.mxu0 %v4454_v19 }
 0x16e   :  { %2998 = vmatpush3.msra.mxu1 %v3708_v8  ;;  %2957 = vmatpush3.msk.msra.mxu0 %vm4449_vm7, %v4442_v63 }
 0x16f   :  { %2999 = vmatprep.subr.mxu1 %v4454_v19  ;;  %2958 = vmatprep.subr.mxu0 %v4454_v19 }
 0x170   :  { %3000 = vmatpush3.msra.mxu1 %v3718_v48  ;;  %2959 = vmatpush3.msk.msra.mxu0 %vm3504_vm11, %v4442_v63 }
 0x171   :  { %3001 = vmatprep.subr.mxu1 %v4454_v19  ;;  %2960 = vmatprep.subr.mxu0 %v4454_v19 }
 0x172   :  { %3002 = vmatpush3.msra.mxu1 %v3725_v51  ;;  %2961 = vmatpush3.msk.msra.mxu0 %vm4465_vm10, %v4442_v63  ;;  %vm4468_vm10 = vnez %v4433_v5 }
 0x173   :  { %3003 = vmatprep.subr.mxu1 %v4454_v19  ;;  %2962 = vmatprep.subr.mxu0 %v4454_v19 }
 0x174   :  { %3004 = vmatpush3.msra.mxu1 %v3731_v12  ;;  %2963 = vmatpush3.msk.msra.mxu0 %vm4466_vm6, %v4442_v63 }
 0x175   :  { %3043 = vmatprep.subr.mxu1 %v4454_v19  ;;  %2964 = vmatprep.subr.mxu0 %v4454_v19 }
 0x176   :  { %2965 = vmatpush3.msk.msra.mxu0 %vm4467_vm15, %v4442_v63  ;;  %2970 = vmatprep.mubr.msk.f32.mxu0 %vm4450_vm13, %v4454_v19 }
 0x177   :  { %2966 = vmatprep.subr.mxu0 %v4454_v19 }
 0x178   :  { %2967 = vmatpush3.msk.msra.mxu0 %vm4468_vm10, %v4442_v63 }
 0x179   :  { %2968 = vmatprep.subr.mxu0 %v4454_v19 }
 0x17a   :  { %2969 = vmatpush3.msk.msra.mxu0 %vm3610_vm8, %v4442_v63 }
 0x17b   :  { %3008 = vmatprep.subr.mxu0 %v4454_v19 }
 0x20b   :  { %v931_v55 = vpop.f32.mrf.mxu1 }
 0x20d   :  { %v2917_v18 = vpop.f32.mrf.mxu1 }
 0x20f   :  { %v1079_v44 = vpop.f32.mrf.mxu1 }
 0x211   :  { %v2927_v8 = vpop.f32.mrf.mxu1 }
 0x213   :  { %v855_v50 = vpop.f32.mrf.mxu0  ;;  %v1225_v9 = vpop.f32.mrf.mxu1 }
 0x214   :  { %v932_v12 = vadd.f32 %v931_v55, %v855_v50 }
 0x215   :  { %v2912_v48 = vpop.f32.mrf.mxu0  ;;  %v2937_v51 = vpop.f32.mrf.mxu1 }
 0x217   :  { %v1005_v20 = vpop.f32.mrf.mxu0 }
 0x218   :  { %v1006_v53 = vadd.f32 %v1005_v20, %v932_v12 }
 0x219   :  { %v2922_v60 = vpop.f32.mrf.mxu0 }
 0x21a   :  { %v1080_v3 = vadd.f32 %v1079_v44, %v1006_v53 }
 0x21b   :  { %v1153_v35 = vpop.f32.mrf.mxu0 }
 0x21c   :  { %v1154_v30 = vadd.f32 %v1153_v35, %v1080_v3 }
 0x21d   :  { %v2932_v49 = vpop.f32.mrf.mxu0 }
 0x21e   :  { %v1226_v37 = vadd.f32 %v1225_v9, %v1154_v30 }
 0x220   :  { %v1229_v41 = vsub.f32 %v4469_v1, %v1226_v37 }
 0x222   :  { %v1230_v32 = vmul.f32 %v1229_v41, %v1229_v41 }
 0x224   :  { %v4087_v43 = vand.u32 4294901760, %v1230_v32 }
 0x226   :  { %v4090_v46 = vsub.f32 %v1230_v32, %v4087_v43  ;;  %3006 = vmatmul.mubr.f32.vlgmr.msra.gmra.mxu1 %v4087_v43 }
 0x227   :  { %3044 = vmatpush3.msk.msra.mxu1 %vm3287_vm12, %v4442_v63  ;;  %3075 = vmatprep.mubr.msk.f32.mxu1 %vm4450_vm13, %v4454_v19 }
 0x228   :  { %3045 = vmatprep.subr.mxu1 %v4454_v19  ;;  %v1314_v47 = vand.u32 4294901760, %v4090_v46 }
 0x229   :  { %3046 = vmatpush3.msk.msra.mxu1 %vm3300_vm0, %v4442_v63 }
 0x22a   :  { %3047 = vmatprep.subr.mxu1 %v4454_v19  ;;  %v1315_v62 = vsub.f32 %v4090_v46, %v1314_v47 }
 0x22b   :  { %3048 = vmatpush3.msk.msra.mxu1 %vm3317_vm1, %v4442_v63 }
 0x22c   :  { %3049 = vmatprep.subr.mxu1 %v4454_v19  ;;  %v1316_v11 = vand.u32 4294901760, %v1315_v62 }
 0x22d   :  { %3050 = vmatpush3.msk.msra.mxu1 %vm3335_vm3, %v4442_v63 }
 0x22e   :  { %3051 = vmatprep.subr.mxu1 %v4454_v19  ;;  %2971 = vmatmul.mubr.f32.vlgmr.msra.gmra.mxu0 %v1316_v11 }
 0x22f   :  { %3009 = vmatpush3.msra.mxu0 %v3321_v22  ;;  %3052 = vmatpush3.msk.msra.mxu1 %vm3351_vm4, %v4442_v63  ;;  %v4474_v22 = vld [vmem:[#allocation11_spill] sm:$0xff] }
 0x230   :  { %3010 = vmatprep.subr.mxu0 %v4454_v19  ;;  %3053 = vmatprep.subr.mxu1 %v4454_v19 }
 0x231   :  { %3011 = vmatpush3.msra.mxu0 %v3339_v25  ;;  %3054 = vmatpush3.msk.msra.mxu1 %vm4462_vm14, %v4442_v63  ;;  %v4477_v25 = vld [vmem:[#allocation16_spill] sm:$0xff] }
 0x232   :  { %3012 = vmatprep.subr.mxu0 %v4454_v19  ;;  %3055 = vmatprep.subr.mxu1 %v4454_v19 }
 0x233   :  { %3013 = vmatpush3.msra.mxu0 %v3358_v29  ;;  %3056 = vmatpush3.msk.msra.mxu1 %vm4446_vm2, %v4442_v63  ;;  %v4480_v29 = vld [vmem:[#allocation21_spill] sm:$0xff] }
 0x234   :  { %3014 = vmatprep.subr.mxu0 %v4454_v19  ;;  %3057 = vmatprep.subr.mxu1 %v4454_v19 }
 0x235   :  { %3015 = vmatpush3.msra.mxu0 %v3378_v33  ;;  %3058 = vmatpush3.msk.msra.mxu1 %vm4447_vm9, %v4442_v63  ;;  %v4482_v33 = vld [vmem:[#allocation26_spill] sm:$0xff] }
 0x236   :  { %3016 = vmatprep.subr.mxu0 %v4454_v19  ;;  %3059 = vmatprep.subr.mxu1 %v4454_v19 }
 0x237   :  { %3017 = vmatpush3.msra.mxu0 %v3398_v38  ;;  %3060 = vmatpush3.msk.msra.mxu1 %vm4452_vm5, %v4442_v63  ;;  %vm4470_vm5 = vnez %v4421_v10  ;;  %v4484_v38 = vld [vmem:[#allocation29_spill] sm:$0xff] }
 0x238   :  { %3018 = vmatprep.subr.mxu0 %v4454_v19  ;;  %3061 = vmatprep.subr.mxu1 %v4454_v19 }
 0x239   :  { %3019 = vmatpush3.msra.mxu0 %v3411_v42  ;;  %3062 = vmatpush3.msk.msra.mxu1 %vm4449_vm7, %v4442_v63  ;;  %v4485_v42 = vld [vmem:[#allocation33_spill] sm:$0xff] }
 0x23a   :  { %3020 = vmatprep.subr.mxu0 %v4454_v19  ;;  %3063 = vmatprep.subr.mxu1 %v4454_v19 }
 0x23b   :  { %3021 = vmatpush3.msra.mxu0 %v3460_v54  ;;  %3064 = vmatpush3.msk.msra.mxu1 %vm3504_vm11, %v4442_v63 }
 0x23c   :  { %3022 = vmatprep.subr.mxu0 %v4454_v19  ;;  %3065 = vmatprep.subr.mxu1 %v4454_v19 }
 0x23d   :  { %3023 = vmatpush3.msra.mxu0 %v3508_v4  ;;  %3066 = vmatpush3.msk.msra.mxu1 %vm4470_vm5, %v4442_v63 }
 0x23e   :  { %3024 = vmatprep.subr.mxu0 %v4454_v19  ;;  %3067 = vmatprep.subr.mxu1 %v4454_v19 }
 0x23f   :  { %3025 = vmatpush3.msra.mxu0 %v3538_v14  ;;  %3068 = vmatpush3.msk.msra.mxu1 %vm4466_vm6, %v4442_v63 }
 0x240   :  { %3026 = vmatprep.subr.mxu0 %v4454_v19  ;;  %3069 = vmatprep.subr.mxu1 %v4454_v19 }
 0x241   :  { %3027 = vmatpush3.msra.mxu0 %v3540_v17  ;;  %3070 = vmatpush3.msk.msra.mxu1 %vm4467_vm15, %v4442_v63 }
 0x242   :  { %3028 = vmatprep.subr.mxu0 %v4454_v19  ;;  %3071 = vmatprep.subr.mxu1 %v4454_v19 }
 0x243   :  { %3029 = vmatpush3.msra.mxu0 %v3582_v40  ;;  %3072 = vmatpush3.msk.msra.mxu1 %vm4468_vm10, %v4442_v63 }
 0x244   :  { %3030 = vmatprep.subr.mxu0 %v4454_v19  ;;  %3073 = vmatprep.subr.mxu1 %v4454_v19 }
 0x245   :  { %3031 = vmatpush3.msra.mxu0 %v3614_v59  ;;  %3074 = vmatpush3.msk.msra.mxu1 %vm3610_vm8, %v4442_v63 }
 0x246   :  { %3032 = vmatprep.subr.mxu0 %v4454_v19  ;;  %3076 = vmatmul.mubr.f32.vlgmr.msra.gmra.mxu1 %v1314_v47  ;;  %v3185_v47 = vld [vmem:[#allocation2] sm:$0xff] }
 0x247   :  { %3113 = vmatprep.subr.mxu1 %v4454_v19  ;;  %3033 = vmatpush3.msra.mxu0 %v3628_v7 }
 0x248   :  { %3114 = vmatpush3.msk.msra.mxu1 %vm3287_vm12, %v4442_v63  ;;  %3034 = vmatprep.subr.mxu0 %v4454_v19  ;;  %vm4488_vm12 = vcmask 1043456  }
 0x249   :  { %3115 = vmatprep.subr.mxu1 %v4454_v19  ;;  %3035 = vmatpush3.msra.mxu0 %v3644_v23 }
 0x24a   :  { %3116 = vmatpush3.msk.msra.mxu1 %vm3300_vm0, %v4442_v63  ;;  %3036 = vmatprep.subr.mxu0 %v4454_v19  ;;  %vm4475_vm0 = vnez %v4410_v52  ;;  %v4487_v52 = vld [vmem:[#allocation32_spill] sm:$0xff] }
 0x24b   :  { %3117 = vmatprep.subr.mxu1 %v4454_v19  ;;  %3037 = vmatpush3.msra.mxu0 %v3673_v61 }
 0x24c   :  { %3118 = vmatpush3.msk.msra.mxu1 %vm3317_vm1, %v4442_v63  ;;  %3038 = vmatprep.subr.mxu0 %v4454_v19  ;;  %vm4489_vm1 = vcmask 31744  }
 0x24d   :  { %3119 = vmatprep.subr.mxu1 %v4454_v19  ;;  %3039 = vmatpush3.msra.mxu0 %v3675_v56 }
 0x24e   :  { %3040 = vmatprep.mubr.msk.f32.mxu0 %vm4450_vm13, %v4454_v19  ;;  %3120 = vmatpush3.msk.msra.mxu1 %vm3335_vm3, %v4442_v63  ;;  %vm4490_vm3 = vmmov %vm4488_vm12 }
 0x24f   :  { %3041 = vmatmul.mubr.f32.vlgmr.msra.gmra.mxu0 %v4090_v46  ;;  %3078 = vmatprep.subr.mxu0 %v4454_v19 }
 0x250   :  { %3121 = vmatprep.subr.mxu1 %v4454_v19  ;;  %3079 = vmatpush3.msra.mxu0 %v3356_v28  ;;  %v4479_v28 = vld [vmem:[#allocation20_spill] sm:$0xff] }
 0x251   :  { %3122 = vmatpush3.msk.msra.mxu1 %vm3351_vm4, %v4442_v63  ;;  %3080 = vmatprep.subr.mxu0 %v4454_v19  ;;  %vm4491_vm4 = vmmov %vm4490_vm3 }
 0x252   :  { %3123 = vmatprep.subr.mxu1 %v4454_v19  ;;  %3081 = vmatpush3.msra.mxu0 %v4471_v13 }
 0x253   :  { %3124 = vmatpush3.msk.msra.mxu1 %vm4462_vm14, %v4442_v63  ;;  %3082 = vmatprep.subr.mxu0 %v4454_v19 }
 0x254   :  { %3125 = vmatprep.subr.mxu1 %v4454_v19  ;;  %3083 = vmatpush3.msra.mxu0 %v4472_v16 }
 0x255   :  { %3126 = vmatpush3.msk.msra.mxu1 %vm4446_vm2, %v4442_v63  ;;  %3084 = vmatprep.subr.mxu0 %v4454_v19 }
 0x256   :  { %3127 = vmatprep.subr.mxu1 %v4454_v19  ;;  %3085 = vmatpush3.msra.mxu0 %v4473_v21 }
 0x257   :  { %3128 = vmatpush3.msk.msra.mxu1 %vm4447_vm9, %v4442_v63  ;;  %3086 = vmatprep.subr.mxu0 %v4454_v19 }
 0x258   :  { %3129 = vmatprep.subr.mxu1 %v4454_v19  ;;  %3087 = vmatpush3.msra.mxu0 %v4474_v22 }
 0x259   :  { %3130 = vmatpush3.msk.msra.mxu1 %vm4475_vm0, %v4442_v63  ;;  %3088 = vmatprep.subr.mxu0 %v4454_v19 }
 0x25a   :  { %3131 = vmatprep.subr.mxu1 %v4454_v19  ;;  %3089 = vmatpush3.msra.mxu0 %v4476_v24 }
 0x25b   :  { %3132 = vmatpush3.msk.msra.mxu1 %vm4449_vm7, %v4442_v63  ;;  %3090 = vmatprep.subr.mxu0 %v4454_v19 }
 0x25c   :  { %3133 = vmatprep.subr.mxu1 %v4454_v19  ;;  %3091 = vmatpush3.msra.mxu0 %v4477_v25 }
 0x25d   :  { %3134 = vmatpush3.msk.msra.mxu1 %vm3504_vm11, %v4442_v63  ;;  %3092 = vmatprep.subr.mxu0 %v4454_v19 }
 0x25e   :  { %3135 = vmatprep.subr.mxu1 %v4454_v19  ;;  %3093 = vmatpush3.msra.mxu0 %v4478_v27 }
 0x25f   :  { %3136 = vmatpush3.msk.msra.mxu1 %vm4470_vm5, %v4442_v63  ;;  %3094 = vmatprep.subr.mxu0 %v4454_v19 }
 0x260   :  { %3137 = vmatprep.subr.mxu1 %v4454_v19  ;;  %3095 = vmatpush3.msra.mxu0 %v4479_v28 }
 0x261   :  { %3138 = vmatpush3.msk.msra.mxu1 %vm4466_vm6, %v4442_v63  ;;  %3096 = vmatprep.subr.mxu0 %v4454_v19 }
 0x262   :  { %3139 = vmatprep.subr.mxu1 %v4454_v19  ;;  %3097 = vmatpush3.msra.mxu0 %v4480_v29 }
 0x263   :  { %3140 = vmatpush3.msk.msra.mxu1 %vm4467_vm15, %v4442_v63  ;;  %3098 = vmatprep.subr.mxu0 %v4454_v19 }
 0x264   :  { %3141 = vmatprep.subr.mxu1 %v4454_v19  ;;  %3099 = vmatpush3.msra.mxu0 %v4481_v31 }
 0x265   :  { %3142 = vmatpush3.msk.msra.mxu1 %vm4468_vm10, %v4442_v63  ;;  %3100 = vmatprep.subr.mxu0 %v4454_v19 }
 0x266   :  { %3143 = vmatprep.subr.mxu1 %v4454_v19  ;;  %3101 = vmatpush3.msra.mxu0 %v4482_v33 }
 0x267   :  { %3144 = vmatpush3.msk.msra.mxu1 %vm3610_vm8, %v4442_v63  ;;  %3145 = vmatprep.mubr.msk.f32.mxu1 %vm4450_vm13, %v4454_v19 }
 0x268   :  { %3102 = vmatprep.subr.mxu0 %v4454_v19  ;;  %3146 = vmatmul.mubr.f32.vlgmr.msra.gmra.mxu1 %v4087_v43 }
 0x269   :  { %3103 = vmatpush3.msra.mxu0 %v4483_v36  ;;  %3110 = vmatprep.mubr.msk.f32.mxu0 %vm4450_vm13, %v4454_v19 }
 0x26a   :  { %3104 = vmatprep.subr.mxu0 %v4454_v19  ;;  %3153 = vmatprep.subr.mxu1 %v4454_v19 }
 0x26b   :  { %3105 = vmatpush3.msra.mxu0 %v4484_v38  ;;  %3154 = vmatpush3.msra.mxu1 %v4485_v42 }
 0x26c   :  { %3106 = vmatprep.subr.mxu0 %v4454_v19  ;;  %3155 = vmatprep.mubr.msk.f32.mxu1 %vm4450_vm13, %v4454_v19 }
 0x26d   :  { %3107 = vmatpush3.msra.mxu0 %v4486_v45  ;;  %3163 = vmatprep.subr.mxu1 %v4454_v19 }
 0x26e   :  { %3108 = vmatprep.subr.mxu0 %v4454_v19 }
 0x26f   :  { %3109 = vmatpush3.msra.mxu0 %v4487_v52 }
 0x270   :  { %3111 = vmatmul.mubr.f32.vlgmr.msra.gmra.mxu0 %v4087_v43  ;;  %3148 = vmatprep.subr.mxu0 %v4454_v19 }
 0x271   :  { %3149 = vmatpush3.msk.msra.mxu0 %vm4488_vm12, %v3949_v15  ;;  %3150 = vmatprep.mubr.msk.f32.mxu0 %vm4450_vm13, %v4454_v19 }
 0x272   :  { %3158 = vmatprep.subr.mxu0 %v4454_v19 }
 0x2e6   :  { %v1469_v54 = vpop.f32.mrf.mxu1 }
 0x2e8   :  { %v3007_v56 = vpop.f32.mrf.mxu1 }
 0x2ee   :  { %v1318_v57 = vpop.f32.mrf.mxu0 }
 0x2ef   :  { %v1470_v17 = vadd.f32 %v1469_v54, %v1318_v57 }
 0x2f0   :  { %v2972_v61 = vpop.f32.mrf.mxu0 }
 0x306   :  { %v1662_v63 = vpop.f32.mrf.mxu1 }
 0x308   :  { %v3077_v0 = vpop.f32.mrf.mxu1 }
 0x30f   :  { %v1573_v4 = vpop.f32.mrf.mxu0 }
 0x310   :  { %v1574_v39 = vadd.f32 %v1573_v4, %v1470_v17 }
 0x311   :  { %v3042_v10 = vpop.f32.mrf.mxu0 }
 0x312   :  { %v1663_v40 = vadd.f32 %v1662_v63, %v1574_v39 }
 0x328   :  { %v1868_v14 = vpop.f32.mrf.mxu1 }
 0x32a   :  { %v3147_v26 = vpop.f32.mrf.mxu1 }
 0x330   :  { %v1781_v5 = vpop.f32.mrf.mxu0 }
 0x331   :  { %v1782_v58 = vadd.f32 %v1781_v5, %v1663_v40 }
 0x332   :  { %v3112_v59 = vpop.f32.mrf.mxu0 }
 0x333   :  { %v1869_v7 = vadd.f32 %v1868_v14, %v1782_v58 }
 0x335   :  { %v1872_v23 = vmul.f32 0.03125, %v1869_v7 }
 0x337   :  { %v1873_v34 = vmax.f32 %v1872_v23, 0.0 }
 0x339   :  { %v1874_v55 = vadd.f32 1e-05, %v1873_v34 }
 0x33b   :  { %3183 = vrsqrt.f32 %v1874_v55 }
 0x348   :  { %v3184_v18 = vpop.eup %3183 }
 0x349   :  { %v1878_v44 = vsel %vm4489_vm1, %v3184_v18, 0 }
 0x34a   :  { %v1946_v8 = vand.u32 4294901760, %v1878_v44 }
 0x34c   :  { %v1947_v50 = vsub.f32 %v1878_v44, %v1946_v8  ;;  %3156 = vmatmul.mubr.f32.vlgmr.msra.gmra.mxu1 %v1946_v8 }
 0x34d   :  { %3164 = vmatpush3.msk.msra.mxu1 %vm4490_vm3, %v3949_v15  ;;  %3165 = vmatprep.mubr.msk.f32.mxu1 %vm4450_vm13, %v4454_v19 }
 0x34e   :  { %v1948_v9 = vand.u32 4294901760, %v1947_v50  ;;  %3173 = vmatprep.subr.mxu1 %v4454_v19 }
 0x350   :  { %3166 = vmatmul.mubr.f32.vlgmr.msra.gmra.mxu1 %v1948_v9  ;;  %v1949_v48 = vsub.f32 %v1947_v50, %v1948_v9 }
 0x351   :  { %3174 = vmatpush3.msk.msra.mxu1 %vm4491_vm4, %v3949_v15  ;;  %3175 = vmatprep.mubr.msk.f32.mxu1 %vm4450_vm13, %v4454_v19 }
 0x352   :  { %v1950_v51 = vand.u32 4294901760, %v1949_v48 }
 0x354   :  { %3151 = vmatmul.mubr.f32.vlgmr.msra.gmra.mxu0 %v1950_v51  ;;  %3176 = vmatmul.mubr.f32.vlgmr.msra.gmra.mxu1 %v1946_v8 }
 0x355   :  { %3159 = vmatpush3.msra.mxu0 %v3955_v6  ;;  %3160 = vmatprep.mubr.msk.f32.mxu0 %vm4450_vm13, %v4454_v19 }
 0x356   :  { %3168 = vmatprep.subr.mxu0 %v4454_v19 }
 0x358   :  { %3161 = vmatmul.mubr.f32.vlgmr.msra.gmra.mxu0 %v1947_v50 }
 0x359   :  { %3169 = vmatpush3.msra.mxu0 %v3959_v2  ;;  %3170 = vmatprep.mubr.msk.f32.mxu0 %vm4450_vm13, %v4454_v19  ;;  %v2469_v19 = vld [vmem:[%s4331_s1] ss:$0 sm:$0xff] }
 0x35c   :  { %3171 = vmatmul.mubr.f32.vlgmr.msra.gmra.mxu0 %v1946_v8 }
 0x40c   :  { %v2028_v15 = vpop.f32.mrf.mxu1 }
 0x40e   :  { %v3157_v12 = vpop.f32.mrf.mxu1 }
 0x410   :  { %v2176_v20 = vpop.f32.mrf.mxu1 }
 0x412   :  { %v3167_v53 = vpop.f32.mrf.mxu1 }
 0x414   :  { %v1952_v60 = vpop.f32.mrf.mxu0  ;;  %v2322_v3 = vpop.f32.mrf.mxu1 }
 0x415   :  { %v2029_v30 = vadd.f32 %v2028_v15, %v1952_v60 }
 0x416   :  { %v3152_v35 = vpop.f32.mrf.mxu0  ;;  %v3177_v6 = vpop.f32.mrf.mxu1 }
 0x418   :  { %v2102_v49 = vpop.f32.mrf.mxu0 }
 0x419   :  { %v2103_v37 = vadd.f32 %v2102_v49, %v2029_v30 }
 0x41a   :  { %v3162_v1 = vpop.f32.mrf.mxu0 }
 0x41b   :  { %v2177_v41 = vadd.f32 %v2176_v20, %v2103_v37 }
 0x41c   :  { %v2250_v32 = vpop.f32.mrf.mxu0 }
 0x41d   :  { %v2251_v43 = vadd.f32 %v2250_v32, %v2177_v41 }
 0x41e   :  { %v3172_v2 = vpop.f32.mrf.mxu0 }
 0x41f   :  { %v2323_v46 = vadd.f32 %v2322_v3, %v2251_v43 }
 0x421   :  { %v2326_v62 = vmul.f32 %v3185_v47, %v2323_v46 }
 0x423   :  { %v2333_v11 = vmul.f32 %v2469_v19, %v2326_v62 }
 0x425   :  { %2334 = vst [vmem:[#allocation5] sm:$0xff] %v2333_v11 }
 0x426   :  { %3217 = shalt.err (!%p3214_p9)
}
 0x427   :  { %2344 = dma.vmem_to_hbm [thread:$0]  %s2342_s16, 128, %s4332_s2, [#allocation4]  }
 0x428   :  { %3228 = dma.done.wait [#allocation4], 128  }
 0x429   :  { %3229 = vsyncadd [#allocation4], 4294967168 }
 0x42a   :  { %2348 = vsyncpa [#allocation3], 1 }
 0x42b   :  { %2349 = vsyncpa [#allocation4], 1 }

</bundles_post_ra>
